<compile_context>
chip_gen: v7x
topology: tpu7x:2x2x1
jax: 0.10.0
libtpu: 0.0.40
codegen_flags: <defaults>
</compile_context>

<pallas_src>
import jax
import jax.numpy as jnp
from jax.experimental import pallas as pl
from jax.experimental.pallas import tpu as pltpu


# ---------------------------------------------------------------------------
# Pallas kernel: fused concat + 3-layer MLP + exp(log_std) epilogue
# ---------------------------------------------------------------------------
def policy_mlp_kernel(x1_ref, x2_ref, w1a_ref, w1b_ref, b1_ref,
                      w2_ref, b2_ref, w3_ref, b3_ref, out_ref):
    # bf16 operands for the MXU; all accumulation / elementwise work in f32.
    x1 = x1_ref[...].astype(jnp.bfloat16)
    x2 = x2_ref[...].astype(jnp.bfloat16)

    # layer 1 (concat fused as a sum of two matmuls) + ReLU
    h1 = (jnp.dot(x1, w1a_ref[...], preferred_element_type=jnp.float32)
          + jnp.dot(x2, w1b_ref[...], preferred_element_type=jnp.float32)
          + b1_ref[...])
    h1 = jnp.maximum(h1, 0.0)

    # layer 2 + ReLU
    h2 = jnp.dot(h1.astype(jnp.bfloat16), w2_ref[...],
                 preferred_element_type=jnp.float32) + b2_ref[...]
    h2 = jnp.maximum(h2, 0.0)

    # output layer -> [TB, 2*act_dim]; exp() only on the log_std half
    out = jnp.dot(h2.astype(jnp.bfloat16), w3_ref[...],
                  preferred_element_type=jnp.float32) + b3_ref[...]

    act_dim = out_ref.shape[1] // 2
    col = jax.lax.broadcasted_iota(jnp.int32, out.shape, dimension=1)
    out_ref[...] = jnp.where(col < act_dim, out, jnp.exp(out))


# ---------------------------------------------------------------------------
# Wrapper: PolicyNetwork.forward semantics
# ---------------------------------------------------------------------------
def policy_network_forward(latent, state, params, *, act_dim, masked_dim=0,
                           block_batch=512):
    w1, b1, w2, b2, w3, b3 = params
    h1d, h2d = w1.shape[1], w2.shape[1]
    out_dim = 2 * act_dim

    if latent is not None and state is not None:
        latent_dim = latent.shape[1]
        x1, x2 = latent, state
        w1a = w1[:latent_dim]
        # Zero rows for the masked leading state features: full `state` can be
        # DMA'd directly and the masked columns contribute exactly zero.
        w1b = jnp.concatenate(
            [jnp.zeros((masked_dim, h1d), w1.dtype), w1[latent_dim:]], axis=0)
    else:
        # Degenerate single-input paths of the original module.
        x1 = latent if state is None else state[:, masked_dim:]
        x2 = jnp.zeros((x1.shape[0], 1), jnp.float32)   # dead second operand
        w1a = w1
        w1b = jnp.zeros((1, h1d), w1.dtype)

    B = x1.shape[0]

    # bf16 weights for the MXU; biases stay f32 for the epilogue.
    w1a_b, w1b_b, w2_b, w3_b = (w.astype(jnp.bfloat16)
                                for w in (w1a, w1b, w2, w3))

    # Batch tiling: full batch in one block when small; 512-row tiles
    # (multiple of 8 sublanes, fits VMEM with lots of headroom) otherwise.
    tb = B if B <= block_batch else block_batch
    nb = pl.cdiv(B, tb)

    flops = 2 * B * (x1.shape[1] * h1d + x2.shape[1] * h1d
                     + h1d * h2d + h2d * out_dim)
    bytes_accessed = (
        int(x1.size) * x1.dtype.itemsize + int(x2.size) * x2.dtype.itemsize
        + sum(int(a.size) * a.dtype.itemsize
              for a in (w1a_b, w1b_b, w2_b, w3_b, b1, b2, b3))
        + B * out_dim * 4)

    row_spec = lambda arr: pl.BlockSpec((tb, arr.shape[1]), lambda i: (i, 0))
    full_spec = lambda arr: pl.BlockSpec(arr.shape, lambda i: (0, 0))  # resident

    out = pl.pallas_call(
        policy_mlp_kernel,
        out_shape=jax.ShapeDtypeStruct((B, out_dim), jnp.float32),
        grid=(nb,),
        in_specs=[
            row_spec(x1), row_spec(x2),
            full_spec(w1a_b), full_spec(w1b_b), full_spec(b1),
            full_spec(w2_b), full_spec(b2),
            full_spec(w3_b), full_spec(b3),
        ],
        out_specs=pl.BlockSpec((tb, out_dim), lambda i: (i, 0)),
        compiler_params=pltpu.CompilerParams(
            dimension_semantics=("parallel",)),
        cost_estimate=pl.CostEstimate(flops=flops,
                                      transcendentals=B * act_dim,
                                      bytes_accessed=bytes_accessed),
    )(x1, x2, w1a_b, w1b_b, b1, w2_b, b2, w3_b, b3)

    # Cheap XLA slices on the lane-dense kernel output.
    mean = out[:, :act_dim]
    std = out[:, act_dim:]          # exp already applied in-kernel
    return mean, std


# ---------------------------------------------------------------------------
# Deterministic parameter construction (shapes from PolicyNetwork.__init__)
# ---------------------------------------------------------------------------
def init_params(key, inp_dim, hidden_dims, out_dim):
    dims = [inp_dim] + list(hidden_dims) + [out_dim]
    params = []
    for i in range(len(dims) - 1):
        key, kw, kb = jax.random.split(key, 3)
        fan_in, fan_out = dims[i], dims[i + 1]
        bound = 1.0 / (fan_in ** 0.5)
        # stored as [in, out] so the kernel uses x @ W (same math as torch x @ W.T)
        w = jax.random.uniform(kw, (fan_in, fan_out), jnp.float32, -bound, bound)
        b = jax.random.uniform(kb, (1, fan_out), jnp.float32, -bound, bound)
        params += [w, b]
    return tuple(params)


if __name__ == "__main__":
    # Small shapes consistent with the module.
    B = 2
    latent_dim = 8
    state_dim = 12
    masked_dim = 2
    hidden_dims = [32, 32]
    act_dim = 6
    inp_dim = latent_dim + state_dim - masked_dim          # 18
    out_dim = 2 * act_dim                                  # 12

    key = jax.random.PRNGKey(0)
    k_lat, k_st, k_par = jax.random.split(key, 3)
    latent = jax.random.normal(k_lat, (B, latent_dim), jnp.float32)
    state = jax.random.normal(k_st, (B, state_dim), jnp.float32)
    params = init_params(k_par, inp_dim, hidden_dims, out_dim)

    mean, std = policy_network_forward(latent, state, params,
                                       act_dim=act_dim, masked_dim=masked_dim)
    jax.block_until_ready((mean, std))

    # Reference: same math as the torch module, mirroring the kernel's
    # bf16-matmul / f32-accumulate numerics.
    w1, b1, w2, b2, w3, b3 = params
    inp = jnp.concatenate([latent, state[:, masked_dim:]], axis=1)

    def bdot(a, w):
        return jnp.dot(a.astype(jnp.bfloat16), w.astype(jnp.bfloat16),
                       preferred_element_type=jnp.float32)

    h = jnp.maximum(bdot(inp, w1) + b1, 0.0)
    h = jnp.maximum(bdot(h, w2) + b2, 0.0)
    base_out = bdot(h, w3) + b3
    ref_mean = base_out[:, :act_dim]
    ref_std = jnp.exp(base_out[:, act_dim:])

    assert not bool(jnp.any(jnp.isnan(mean))) and not bool(jnp.any(jnp.isnan(std)))
    assert mean.shape == (B, act_dim) and std.shape == (B, act_dim)
    assert jnp.allclose(mean, ref_mean, atol=1e-3, rtol=1e-3)
    assert jnp.allclose(std, ref_std, atol=1e-3, rtol=1e-3)

    print("KERNEL_OK")
</pallas_src>

<mosaic_0001>
module attributes {stable_mosaic.version = 11 : i64} {
  func.func @policy_mlp_kernel(%arg0: i32, %arg1: memref<2x8xf32, #tpu.memory_space<vmem>>, %arg2: memref<2x12xf32, #tpu.memory_space<vmem>>, %arg3: memref<8x32xbf16, #tpu.memory_space<vmem>>, %arg4: memref<12x32xbf16, #tpu.memory_space<vmem>>, %arg5: memref<1x32xf32, #tpu.memory_space<vmem>>, %arg6: memref<32x32xbf16, #tpu.memory_space<vmem>>, %arg7: memref<1x32xf32, #tpu.memory_space<vmem>>, %arg8: memref<32x12xbf16, #tpu.memory_space<vmem>>, %arg9: memref<1x12xf32, #tpu.memory_space<vmem>>, %arg10: memref<2x12xf32, #tpu.memory_space<vmem>>) attributes {dimension_semantics = [#tpu.dimension_semantics<parallel>], iteration_bounds = array<i64: 1>, scalar_prefetch = 0 : i64, scratch_operands = 0 : i64, tpu.core_type = #tpu.core_type<tc>, window_params = [{transform_indices = @transform_0, window_bounds = array<i64: 2, 8>}, {transform_indices = @transform_1, window_bounds = array<i64: 2, 12>}, {pipeline_mode = #tpu.pipeline_mode<synchronous>, transform_indices = @transform_2, window_bounds = array<i64: 8, 32>}, {pipeline_mode = #tpu.pipeline_mode<synchronous>, transform_indices = @transform_3, window_bounds = array<i64: 12, 32>}, {pipeline_mode = #tpu.pipeline_mode<synchronous>, transform_indices = @transform_4, window_bounds = array<i64: 1, 32>}, {pipeline_mode = #tpu.pipeline_mode<synchronous>, transform_indices = @transform_5, window_bounds = array<i64: 32, 32>}, {pipeline_mode = #tpu.pipeline_mode<synchronous>, transform_indices = @transform_6, window_bounds = array<i64: 1, 32>}, {pipeline_mode = #tpu.pipeline_mode<synchronous>, transform_indices = @transform_7, window_bounds = array<i64: 32, 12>}, {pipeline_mode = #tpu.pipeline_mode<synchronous>, transform_indices = @transform_8, window_bounds = array<i64: 1, 12>}, {transform_indices = @transform_9, window_bounds = array<i64: 2, 12>}]} {
    %c0 = arith.constant 0 : index
    %c0_0 = arith.constant 0 : index
    %0 = vector.load %arg1[%c0, %c0_0] : memref<2x8xf32, #tpu.memory_space<vmem>>, vector<2x8xf32>
    %1 = arith.truncf %0 : vector<2x8xf32> to vector<2x8xbf16>
    %c0_1 = arith.constant 0 : index
    %c0_2 = arith.constant 0 : index
    %2 = vector.load %arg2[%c0_1, %c0_2] : memref<2x12xf32, #tpu.memory_space<vmem>>, vector<2x12xf32>
    %3 = arith.truncf %2 : vector<2x12xf32> to vector<2x12xbf16>
    %c0_3 = arith.constant 0 : index
    %c0_4 = arith.constant 0 : index
    %4 = vector.load %arg3[%c0_3, %c0_4] : memref<8x32xbf16, #tpu.memory_space<vmem>>, vector<8x32xbf16>
    %cst = arith.constant dense<0.000000e+00> : vector<2x32xf32>
    %5 = tpu.matmul %1, %4, %cst {dimension_numbers = #tpu.dot_dimension_numbers<[1], [0], [0], [1], [0, 0, 1, 1], [], []>} : vector<2x8xbf16>, vector<8x32xbf16>, vector<2x32xf32> -> vector<2x32xf32>
    %c0_5 = arith.constant 0 : index
    %c0_6 = arith.constant 0 : index
    %6 = vector.load %arg4[%c0_5, %c0_6] : memref<12x32xbf16, #tpu.memory_space<vmem>>, vector<12x32xbf16>
    %cst_7 = arith.constant dense<0.000000e+00> : vector<2x32xf32>
    %7 = tpu.matmul %3, %6, %cst_7 {dimension_numbers = #tpu.dot_dimension_numbers<[1], [0], [0], [1], [0, 0, 1, 1], [], []>} : vector<2x12xbf16>, vector<12x32xbf16>, vector<2x32xf32> -> vector<2x32xf32>
    %8 = arith.addf %5, %7 : vector<2x32xf32>
    %c0_8 = arith.constant 0 : index
    %c0_9 = arith.constant 0 : index
    %9 = vector.load %arg5[%c0_8, %c0_9] : memref<1x32xf32, #tpu.memory_space<vmem>>, vector<1x32xf32>
    %10 = vector.broadcast %9 : vector<1x32xf32> to vector<2x32xf32>
    %11 = arith.addf %8, %10 : vector<2x32xf32>
    %cst_10 = arith.constant 0.000000e+00 : f32
    %12 = vector.broadcast %cst_10 : f32 to vector<2x32xf32>
    %13 = arith.maximumf %11, %12 : vector<2x32xf32>
    %14 = arith.truncf %13 : vector<2x32xf32> to vector<2x32xbf16>
    %c0_11 = arith.constant 0 : index
    %c0_12 = arith.constant 0 : index
    %15 = vector.load %arg6[%c0_11, %c0_12] : memref<32x32xbf16, #tpu.memory_space<vmem>>, vector<32x32xbf16>
    %cst_13 = arith.constant dense<0.000000e+00> : vector<2x32xf32>
    %16 = tpu.matmul %14, %15, %cst_13 {dimension_numbers = #tpu.dot_dimension_numbers<[1], [0], [0], [1], [0, 0, 1, 1], [], []>} : vector<2x32xbf16>, vector<32x32xbf16>, vector<2x32xf32> -> vector<2x32xf32>
    %c0_14 = arith.constant 0 : index
    %c0_15 = arith.constant 0 : index
    %17 = vector.load %arg7[%c0_14, %c0_15] : memref<1x32xf32, #tpu.memory_space<vmem>>, vector<1x32xf32>
    %18 = vector.broadcast %17 : vector<1x32xf32> to vector<2x32xf32>
    %19 = arith.addf %16, %18 : vector<2x32xf32>
    %cst_16 = arith.constant 0.000000e+00 : f32
    %20 = vector.broadcast %cst_16 : f32 to vector<2x32xf32>
    %21 = arith.maximumf %19, %20 : vector<2x32xf32>
    %22 = arith.truncf %21 : vector<2x32xf32> to vector<2x32xbf16>
    %c0_17 = arith.constant 0 : index
    %c0_18 = arith.constant 0 : index
    %23 = vector.load %arg8[%c0_17, %c0_18] : memref<32x12xbf16, #tpu.memory_space<vmem>>, vector<32x12xbf16>
    %cst_19 = arith.constant dense<0.000000e+00> : vector<2x12xf32>
    %24 = tpu.matmul %22, %23, %cst_19 {dimension_numbers = #tpu.dot_dimension_numbers<[1], [0], [0], [1], [0, 0, 1, 1], [], []>} : vector<2x32xbf16>, vector<32x12xbf16>, vector<2x12xf32> -> vector<2x12xf32>
    %c0_20 = arith.constant 0 : index
    %c0_21 = arith.constant 0 : index
    %25 = vector.load %arg9[%c0_20, %c0_21] : memref<1x12xf32, #tpu.memory_space<vmem>>, vector<1x12xf32>
    %26 = vector.broadcast %25 : vector<1x12xf32> to vector<2x12xf32>
    %27 = arith.addf %24, %26 : vector<2x12xf32>
    %28 = tpu.iota {dimensions = array<i32: 1>} : vector<2x12xi32>
    %c6_i32 = arith.constant 6 : i32
    %29 = vector.broadcast %c6_i32 : i32 to vector<2x12xi32>
    %30 = arith.cmpi slt, %28, %29 : vector<2x12xi32>
    %31 = math.exp %27 : vector<2x12xf32>
    %32 = arith.select %30, %27, %31 : vector<2x12xi1>, vector<2x12xf32>
    %c0_22 = arith.constant 0 : index
    %c0_23 = arith.constant 0 : index
    %33 = vector.load %arg10[%c0_22, %c0_23] : memref<2x12xf32, #tpu.memory_space<vmem>>, vector<2x12xf32>
    tpu.vector_store %arg10[%c0_22, %c0_23], %32 {strides = array<i32>} : memref<2x12xf32, #tpu.memory_space<vmem>>, vector<2x12xf32>,
    return
  }
  func.func @transform_0(%arg0: i32) -> (i32, i32) {
    %c0_i32 = arith.constant 0 : i32
    %c0_i32_0 = arith.constant 0 : i32
    return %arg0, %c0_i32 : i32, i32
  }
  func.func @transform_1(%arg0: i32) -> (i32, i32) {
    %c0_i32 = arith.constant 0 : i32
    %c0_i32_0 = arith.constant 0 : i32
    return %arg0, %c0_i32 : i32, i32
  }
  func.func @transform_2(%arg0: i32) -> (i32, i32) {
    %c0_i32 = arith.constant 0 : i32
    %c0_i32_0 = arith.constant 0 : i32
    %c0_i32_1 = arith.constant 0 : i32
    return %c0_i32, %c0_i32_0 : i32, i32
  }
  func.func @transform_3(%arg0: i32) -> (i32, i32) {
    %c0_i32 = arith.constant 0 : i32
    %c0_i32_0 = arith.constant 0 : i32
    %c0_i32_1 = arith.constant 0 : i32
    return %c0_i32, %c0_i32_0 : i32, i32
  }
  func.func @transform_4(%arg0: i32) -> (i32, i32) {
    %c0_i32 = arith.constant 0 : i32
    %c0_i32_0 = arith.constant 0 : i32
    %c0_i32_1 = arith.constant 0 : i32
    return %c0_i32, %c0_i32_0 : i32, i32
  }
  func.func @transform_5(%arg0: i32) -> (i32, i32) {
    %c0_i32 = arith.constant 0 : i32
    %c0_i32_0 = arith.constant 0 : i32
    %c0_i32_1 = arith.constant 0 : i32
    return %c0_i32, %c0_i32_0 : i32, i32
  }
  func.func @transform_6(%arg0: i32) -> (i32, i32) {
    %c0_i32 = arith.constant 0 : i32
    %c0_i32_0 = arith.constant 0 : i32
    %c0_i32_1 = arith.constant 0 : i32
    return %c0_i32, %c0_i32_0 : i32, i32
  }
  func.func @transform_7(%arg0: i32) -> (i32, i32) {
    %c0_i32 = arith.constant 0 : i32
    %c0_i32_0 = arith.constant 0 : i32
    %c0_i32_1 = arith.constant 0 : i32
    return %c0_i32, %c0_i32_0 : i32, i32
  }
  func.func @transform_8(%arg0: i32) -> (i32, i32) {
    %c0_i32 = arith.constant 0 : i32
    %c0_i32_0 = arith.constant 0 : i32
    %c0_i32_1 = arith.constant 0 : i32
    return %c0_i32, %c0_i32_0 : i32, i32
  }
  func.func @transform_9(%arg0: i32) -> (i32, i32) {
    %c0_i32 = arith.constant 0 : i32
    %c0_i32_0 = arith.constant 0 : i32
    return %arg0, %c0_i32 : i32, i32
  }
}

</mosaic_0001>

<bundles_post_ra>
// kernel: tpu_custom_call.1
= control target key start
LH: loop header
LB: loop body
LE: loop exit
PB: predicated region body
PF: predicated region fallthrough
CT: control target
= control target key end

     0   :  { %14 = vsyncpa [#allocation3], 0  ;;  %s543_s0 = inlined_call_operand.vmem [shape: f32[2,8], index: 0, kind: input, shape index: {}]   ;;  %s544_s1 = inlined_call_operand.hbm [shape: f32[2,12], index: 1, kind: input, shape index: {}]   ;;  %s545_s2 = inlined_call_operand.vmem [shape: bf16[8,32], index: 2, kind: input, shape index: {}]   ;;  %s546_s3 = inlined_call_operand.vmem [shape: bf16[12,32], index: 3, kind: input, shape index: {}]   ;;  %s547_s4 = inlined_call_operand.vmem [shape: f32[1,32], index: 4, kind: input, shape index: {}]   ;;  %s548_s5 = inlined_call_operand.vmem [shape: bf16[32,32], index: 5, kind: input, shape index: {}]   ;;  %s549_s6 = inlined_call_operand.vmem [shape: f32[1,32], index: 6, kind: input, shape index: {}]   ;;  %s550_s7 = inlined_call_operand.vmem [shape: bf16[32,12], index: 7, kind: input, shape index: {}]   ;;  %s551_s8 = inlined_call_operand.vmem [shape: f32[1,12], index: 8, kind: input, shape index: {}]   ;;  %s552_s9 = inlined_call_operand.hbm [shape: f32[2,12], index: 9, kind: output, shape index: {}]  }
   0x1   :  { %15 = vsyncpa [#allocation4], 0  ;;  %s431_s30 = smov [#allocation2]   ;;  %s383_s13 = scalar_lea.hbm %s544_s1, 32 }
   0x2   :  { %s24_s10 = sshll.u32 %s431_s30, 4  ;;  %p384_p0 = scmp.ne.s32.totalorder %s544_s1, %s383_s13  ;;  %s25_s10 = int_to_ptr.vmem [resolvable:$true] %s24_s10 }
   0x3   :  { %p387_p1 = scmp.lt.u32.totalorder %s383_s13, %s544_s1 }
   0x5   :  { %p389_p2 = pnand %p387_p1, %p384_p0 }
   0x7   :  { %392 = shalt.err (!%p389_p2)
}
   0x8   :  { %s393_s18 = scalar_lea.vmem %s25_s10, 32  ;;  %p398_p4 = scmp.lt.s32.totalorder %s25_s10, %s25_s10 }
   0x9   :  { %p394_p3 = scmp.ne.s32.totalorder %s25_s10, %s393_s18  ;;  %p399_p5 = scmp.lt.s32.totalorder %s393_s18, %s393_s18 }
   0xb   :  { %p400_p6 = por %p399_p5, %p398_p4 }
   0xd   :  { %p401_p7 = pnand %p400_p6, %p394_p3 }
   0xf   :  { %404 = shalt.err (!%p401_p7)
}
  0x10   :  { %27 = dma.hbm_to_vmem [thread:$0]  %s544_s1, 32, %s25_s10, [#allocation3]  }
  0x11   :  { %427 = dma.done.wait [#allocation3], 32  }
  0x12   :  { %428 = vsyncadd [#allocation3], 4294967264  ;;  %v432_v0 = vmov 0.0   ;;  %vm433_vm0 = vmmov 0   ;;  %vm110_vm1 = vcmask 1043456   ;;  %vm62_vm2 = vcmask 1045504  }
  0x13   :  { %350 = vmatprep.subr.bf16.mxu1 %v432_v0  ;;  %344 = vmatprep.subr.bf16.mxu0 %v432_v0  ;;  %v50_v1 = vld [vmem:[%s545_s2] sm:$0xf]  ;;  %vm106_vm3 = vcmask 64512   ;;  %vm58_vm4 = vcmask 97280   ;;  %v378_v10 = vld [vmem:[%s548_s5 + $0x8] sm:$0xff]   ;;  %vm187_vm5 = vcmask 261120   ;;  %v299_v41 = vlaneseq }
  0x14   :  { %352 = vmatprep.mubr.msk.bf16.mxu1 %vm433_vm0, %v432_v0  ;;  %346 = vmatprep.mubr.msk.bf16.mxu0 %vm433_vm0, %v432_v0  ;;  %v112_v2 = vsel %vm110_vm1, %v50_v1, 0  ;;  %v376_v3 = vld [vmem:[%s546_s3] sm:$0x3f]   ;;  %v380_v25 = vld [vmem:[%s550_s7 + $0x8] sm:$0xff]   ;;  %vm305_vm7 = vcmask 91136  }
  0x15   :  { %v46_v4 = vld [vmem:[%s543_s0] sm:$0x3]  ;;  %351 = vmatpush3.bf16.msra.mxu1 %v112_v2  ;;  %v64_v7 = vsel %vm62_vm2, %v376_v3, 0  ;;  %v300_v42 = vand.u32 127, %v299_v41 }
  0x16   :  { %v47_v5 = vpack.c.bf16 %v46_v4, %v46_v4  ;;  %v48_v6 = vld [vmem:[#allocation2] sm:$0x3]  ;;  %364 = vmatprep.subr.bf16.mxu1 %v432_v0  ;;  %345 = vmatpush3.bf16.msra.mxu0 %v64_v7 }
  0x17   :  { %v49_v8 = vpack.c.bf16 %v48_v6, %v48_v6  ;;  %356 = vmatprep.subr.bf16.mxu0 %v432_v0  ;;  %v377_v9 = vld [vmem:[%s548_s5] sm:$0xff]   ;;  %vm301_vm6 = vcmp.lt.s32.totalorder %v300_v42, 6 }
  0x18   :  { %353 = vmatmul.mubr.msk.bf16.vlgmr.msra.gmra.mrb[0].mxu1 %vm106_vm3, %v47_v5  ;;  %v379_v11 = vld [vmem:[%s550_s7] sm:$0xff]  }
  0x19   :  { %368 = vmatprep.mubr.msk.bf16.mxu1 %vm433_vm0, %v432_v0  ;;  %347 = vmatmul.mubr.msk.bf16.vlgmr.msra.gmra.mrb[0].mxu0 %vm58_vm4, %v49_v8  ;;  %v325_v15 = vld [vmem:[%s547_s4] ss:$0 sm:$0xff] }
  0x1a   :  { %360 = vmatprep.mubr.msk.bf16.mxu0 %vm433_vm0, %v432_v0  ;;  %357 = vmatpush3.bf16.msra.mxu0 %v377_v9  ;;  %v326_v26 = vld [vmem:[%s549_s6] ss:$0 sm:$0xff]  ;;  %s434_s6 = smov [#allocation5]  }
  0x1b   :  { %358 = vmatprep.subr.bf16.mxu0 %v432_v0  ;;  %365 = vmatpush3.bf16.msra.mxu1 %v379_v11  ;;  %v330_v34 = vld [vmem:[%s551_s8] ss:$0 sm:$0xff]  ;;  %s313_s7 = sshll.u32 %s434_s6, 4  ;;  %s314_s7 = int_to_ptr.vmem [resolvable:$true] %s313_s7 }
  0x1c   :  { %366 = vmatprep.subr.bf16.mxu1 %v432_v0  ;;  %s405_s14 = scalar_lea.vmem %s314_s7, 32  ;;  %p410_p9 = scmp.lt.s32.totalorder %s314_s7, %s314_s7 }
  0x1d   :  { %p406_p8 = scmp.ne.s32.totalorder %s314_s7, %s405_s14  ;;  %p411_p10 = scmp.lt.s32.totalorder %s405_s14, %s405_s14 }
  0x1e   :  { %359 = vmatpush3.bf16.msra.mxu0 %v378_v10 }
  0x1f   :  { %367 = vmatpush3.bf16.msra.mxu1 %v380_v25  ;;  %p412_p11 = por %p411_p10, %p410_p9 }
  0x21   :  { %p413_p12 = pnand %p412_p11, %p406_p8 }
  0xeb   :  { %v148_v12 = vpop.f32.mrb[0].mxu1 }
  0xec   :  { %v354_v13 = vpop.f32.mrb[1].mxu1  ;;  %v100_v14 = vpop.f32.mrb[0].mxu0 }
  0xed   :  { %v151_v16 = vpop.f32.mrb[2].mxu1  ;;  %v149_v17 = vadd.f32 %v148_v12, %v100_v14  ;;  %v348_v18 = vpop.f32.mrb[1].mxu0 }
  0xee   :  { %v355_v19 = vpop.f32.mrb[3].mxu1  ;;  %v103_v20 = vpop.f32.mrb[2].mxu0 }
  0xef   :  { %v161_v21 = vadd.f32 %v325_v15, %v149_v17  ;;  %v349_v22 = vpop.f32.mrb[3].mxu0 }
  0xf1   :  { %v162_v23 = vmax.f32 %v161_v21, 0.0 }
  0xf3   :  { %v163_v24 = vpack.c.bf16 %v162_v23, %v162_v23 }
  0xf5   :  { %361 = vmatmul.mubr.msk.bf16.vlgmr.msra.gmra.mrb[4].mxu0 %vm187_vm5, %v163_v24 }
 0x1c8   :  { %v225_v27 = vpop.f32.mrb[4].mxu0 }
 0x1c9   :  { %v226_v28 = vadd.f32 %v326_v26, %v225_v27  ;;  %v362_v29 = vpop.f32.mrb[5].mxu0 }
 0x1ca   :  { %v228_v30 = vpop.f32.mrb[6].mxu0 }
 0x1cb   :  { %v231_v31 = vmax.f32 %v226_v28, 0.0  ;;  %v363_v32 = vpop.f32.mrb[7].mxu0 }
 0x1cd   :  { %v232_v33 = vpack.c.bf16 %v231_v31, %v231_v31 }
 0x1cf   :  { %369 = vmatmul.mubr.msk.bf16.vlgmr.msra.gmra.mrb[4].mxu1 %vm187_vm5, %v232_v33 }
 0x2a2   :  { %v293_v35 = vpop.f32.mrb[4].mxu1 }
 0x2a3   :  { %v294_v36 = vadd.f32 %v330_v34, %v293_v35  ;;  %v370_v37 = vpop.f32.mrb[5].mxu1 }
 0x2a4   :  { %v296_v38 = vpop.f32.mrb[6].mxu1 }
 0x2a5   :  { %v302_v39 = vmul.f32 1.442695, %v294_v36  ;;  %v371_v40 = vpop.f32.mrb[7].mxu1 }
 0x2a7   :  { %381 = vpow2.f32 %v302_v39 }
 0x2b1   :  { %v382_v43 = vpop.eup %381 }
 0x2b2   :  { %v304_v44 = vsel %vm301_vm6, %v294_v36, %v382_v43 }
 0x2b3   :  { %306 = vst.msk [vmem:[#allocation5] sm:$0x3] %vm305_vm7, %v304_v44 }
 0x2b4   :  { %416 = shalt.err (!%p413_p12)
}
 0x2b5   :  { %s417_s16 = scalar_lea.hbm %s552_s9, 32 }
 0x2b6   :  { %p418_p13 = scmp.ne.s32.totalorder %s552_s9, %s417_s16  ;;  %p421_p0 = scmp.lt.u32.totalorder %s417_s16, %s552_s9 }
 0x2b8   :  { %p423_p1 = pnand %p421_p0, %p418_p13 }
 0x2ba   :  { %426 = shalt.err (!%p423_p1)
}
 0x2bb   :  { %316 = dma.vmem_to_hbm [thread:$0]  %s314_s7, 32, %s552_s9, [#allocation4]  }
 0x2bc   :  { %429 = dma.done.wait [#allocation4], 32  }
 0x2bd   :  { %430 = vsyncadd [#allocation4], 4294967264 }
 0x2be   :  { %320 = vsyncpa [#allocation3], 1 }
 0x2bf   :  { %321 = vsyncpa [#allocation4], 1 }

</bundles_post_ra>
